<compile_context>
chip_gen: v7x
topology: tpu7x:2x2x1
jax: 0.10.0
libtpu: 0.0.40
codegen_flags: <defaults>
</compile_context>

<pallas_src>
import jax
import jax.numpy as jnp
from jax.experimental import pallas as pl
from jax.experimental.pallas import tpu as pltpu  # noqa: F401


def _gru_kernel(x2d_ref, h0_ref, wx_ref, b_ref, whz_ref, whr_ref, whh_ref,
                wo_ref, bo_ref, pred_ref, hout_ref):
    TB, _ = x2d_ref.shape
    _, B, H = h0_ref.shape
    T = TB // B

    # Hoist loop-invariant Ref loads (JAX does not CSE these).
    whz = whz_ref[...]                         # (H, H)  Wz hidden-part, transposed
    whr = whr_ref[...]                         # (H, H)  Wr hidden-part, transposed
    whh = whh_ref[...]                         # (H, H)  Wh hidden-part, transposed

    # Input projection of every gate and every timestep: one (T*B, D) @ (D, 3H)
    # matmul + bias, completely off the serial recurrence chain.
    xproj = (jnp.dot(x2d_ref[...], wx_ref[...],
                     preferred_element_type=jnp.float32)
             + b_ref[...])                     # (T*B, 3H) = [xz | xr | xh]

    # Per-gate lane splits hoisted out of the loop: H=32 cuts a vreg at lane
    # offsets 32/64 (not 128-aligned), so do the cross-lane work 3x total
    # instead of 3*T times on the critical path.
    xz_all = xproj[:, :H]
    xr_all = xproj[:, H:2 * H]
    xh_all = xproj[:, 2 * H:]

    s = h0_ref[0]                              # (B, H) hidden, carried in vregs

    # Fully unrolled recurrence (T is a small static constant).  Row slices are
    # static and sublane-aligned (B is padded to a multiple of 8).
    for t in range(T):
        lo = t * B
        xz = xz_all[lo:lo + B]
        xr = xr_all[lo:lo + B]
        xh = xh_all[lo:lo + B]
        z = jax.nn.sigmoid(
            xz + jnp.dot(s, whz, preferred_element_type=jnp.float32))
        r = jax.nn.sigmoid(
            xr + jnp.dot(s, whr, preferred_element_type=jnp.float32))
        h_tilde = jnp.tanh(
            xh + jnp.dot(r * s, whh, preferred_element_type=jnp.float32))
        # (1 - z) * h~ + z * s  ==  h~ + z * (s - h~): one fewer VPU op on the
        # tail of each step's dependence chain.
        s = h_tilde + z * (s - h_tilde)

    # Output head + softmax(dim=1) over the (B, O) logits.  Exact division:
    # the denominator has only a couple of lanes, the EUP approximation bought
    # nothing and cost ~1e-3 relative error.
    logits = (jnp.dot(s, wo_ref[...], preferred_element_type=jnp.float32)
              + bo_ref[...])
    m = jnp.max(logits, axis=1, keepdims=True)
    e = jnp.exp(logits - m)
    pred_ref[...] = e / jnp.sum(e, axis=1, keepdims=True)
    hout_ref[0] = s


def manual_gru_forward(input_sequence, hidden, params):
    """Pallas implementation of ManualGRU.forward.

    input_sequence: (T, B, D) float32
    hidden:         (1, B, H) float32
    params: wz/wr/wh (H, D+H), bz/br/bh (H,), wo (O, H), bo (O,)
    returns (prediction (B, O), hidden (1, B, H))
    """
    T, B, D = input_sequence.shape
    H = hidden.shape[-1]
    O = params["wo"].shape[0]
    f32 = jnp.float32

    # Fill sublanes: B=2 uses 2/8 sublanes of every vreg (and 2 MXU rows).
    # Pad the batch to a multiple of 8 — per-step latency is unchanged and the
    # padded rows are sliced off after the call.  Layout plumbing only.
    B_pad = ((B + 7) // 8) * 8
    pad = B_pad - B
    x_p = jnp.pad(input_sequence.astype(f32), ((0, 0), (0, pad), (0, 0)))
    h_p = jnp.pad(hidden.astype(f32), ((0, 0), (0, pad), (0, 0)))

    wz, wr, wh = params["wz"], params["wr"], params["wh"]

    # combined = [x, s]: split each gate weight into x-part / h-part and
    # pre-transpose to "v @ W^T" form.  x-parts are packed (one hoisted
    # projection matmul); h-parts stay per gate so nothing on the serial chain
    # needs a non-128-aligned lane split.
    wx = jnp.concatenate([wz[:, :D].T, wr[:, :D].T, wh[:, :D].T], axis=1)  # (D, 3H)
    whz = wz[:, D:].T                                                      # (H, H)
    whr = wr[:, D:].T                                                      # (H, H)
    whh = wh[:, D:].T                                                      # (H, H)
    b = jnp.concatenate([params["bz"], params["br"], params["bh"]]).reshape(1, 3 * H)
    wo_t = params["wo"].T                                                  # (H, O)
    bo = params["bo"].reshape(1, O)

    # One 2-D slab for the hoisted input-projection matmul.
    x2d = x_p.reshape(T * B_pad, D)

    pred, h_out = pl.pallas_call(
        _gru_kernel,
        out_shape=(
            jax.ShapeDtypeStruct((B_pad, O), f32),
            jax.ShapeDtypeStruct((1, B_pad, H), f32),
        ),
        # No grid / BlockSpecs: every operand is a few KiB and lives whole in
        # VMEM on v5e/v6e/v7x (well under the 64 MiB v7x budget).  If T*B*D or
        # H ever scale up, give x2d a T-chunked BlockSpec and (on v7x) add a
        # "parallel" batch grid axis to use the second TensorCore.
    )(x2d, h_p, wx.astype(f32), b.astype(f32), whz.astype(f32),
      whr.astype(f32), whh.astype(f32), wo_t.astype(f32), bo.astype(f32))

    return pred[:B], h_out[:, :B, :]


def init_params(key, input_dim, hidden_dim, output_dim=2):
    """Mirror PyTorch nn.Linear default init: U(-1/sqrt(fan_in), 1/sqrt(fan_in))."""
    ks = jax.random.split(key, 8)
    cd = input_dim + hidden_dim

    def u(k, shape, fan_in):
        bound = 1.0 / jnp.sqrt(jnp.float32(fan_in))
        return jax.random.uniform(k, shape, jnp.float32, -bound, bound)

    return {
        "wz": u(ks[0], (hidden_dim, cd), cd), "bz": u(ks[1], (hidden_dim,), cd),
        "wr": u(ks[2], (hidden_dim, cd), cd), "br": u(ks[3], (hidden_dim,), cd),
        "wh": u(ks[4], (hidden_dim, cd), cd), "bh": u(ks[5], (hidden_dim,), cd),
        "wo": u(ks[6], (output_dim, hidden_dim), hidden_dim),
        "bo": u(ks[7], (output_dim,), hidden_dim),
    }


def _reference_forward(x, h0, p):
    """Pure-JAX reference of ManualGRU.forward (matmuls pinned to full f32)."""
    hp = jax.lax.Precision.HIGHEST

    def dot(a, b):
        return jnp.dot(a, b, precision=hp)

    h = h0                                                 # (1, B, H)
    for t in range(x.shape[0]):
        xt = x[t][None]                                    # (1, B, D)
        c = jnp.concatenate([xt, h], axis=2)
        z = jax.nn.sigmoid(dot(c, p["wz"].T) + p["bz"])
        r = jax.nn.sigmoid(dot(c, p["wr"].T) + p["br"])
        h_tilde = jnp.tanh(
            dot(jnp.concatenate([xt, r * h], axis=2), p["wh"].T) + p["bh"])
        h = (1.0 - z) * h_tilde + z * h
    logits = dot(h, p["wo"].T) + p["bo"]                   # (1, B, O)
    return jax.nn.softmax(logits[0], axis=1), h


if __name__ == "__main__":
    seq_len, batch, input_dim, hidden_size = 8, 2, 4, 32

    key = jax.random.PRNGKey(0)
    k_x, k_h, k_p = jax.random.split(key, 3)
    x = jax.random.normal(k_x, (seq_len, batch, input_dim), jnp.float32)
    h0 = jax.random.normal(k_h, (1, batch, hidden_size), jnp.float32)
    params = init_params(k_p, input_dim, hidden_size)

    pred, h_out = manual_gru_forward(x, h0, params)
    jax.block_until_ready((pred, h_out))

    ref_pred, ref_h = _reference_forward(x, h0, params)

    assert pred.shape == (batch, 2)
    assert h_out.shape == (1, batch, hidden_size)
    # The kernel itself uses no approximations (exact softmax division, all
    # VPU/EUP math in f32).  The tolerance only has to absorb the difference
    # between Mosaic's default handling of f32 MXU operands and the
    # Precision.HIGHEST reference (bf16-pass vs multi-pass accumulation),
    # which differs across TPU generations.
    assert jnp.allclose(h_out, ref_h, atol=2e-3, rtol=2e-3)
    assert jnp.allclose(pred, ref_pred, atol=2e-3, rtol=2e-3)

    print("KERNEL_OK")
</pallas_src>

<mosaic_0001>
module attributes {stable_mosaic.version = 11 : i64} {
  func.func @_gru_kernel(%arg0: memref<64x4xf32, #tpu.memory_space<vmem>>, %arg1: memref<1x8x32xf32, #tpu.memory_space<vmem>>, %arg2: memref<4x96xf32, #tpu.memory_space<vmem>>, %arg3: memref<1x96xf32, #tpu.memory_space<vmem>>, %arg4: memref<32x32xf32, #tpu.memory_space<vmem>>, %arg5: memref<32x32xf32, #tpu.memory_space<vmem>>, %arg6: memref<32x32xf32, #tpu.memory_space<vmem>>, %arg7: memref<32x2xf32, #tpu.memory_space<vmem>>, %arg8: memref<1x2xf32, #tpu.memory_space<vmem>>, %arg9: memref<8x2xf32, #tpu.memory_space<vmem>>, %arg10: memref<1x8x32xf32, #tpu.memory_space<vmem>>) attributes {dimension_semantics = [], scalar_prefetch = 0 : i64, scratch_operands = 0 : i64, tpu.core_type = #tpu.core_type<tc>} {
    %c0 = arith.constant 0 : index
    %c0_0 = arith.constant 0 : index
    %0 = vector.load %arg4[%c0, %c0_0] : memref<32x32xf32, #tpu.memory_space<vmem>>, vector<32x32xf32>
    %c0_1 = arith.constant 0 : index
    %c0_2 = arith.constant 0 : index
    %1 = vector.load %arg5[%c0_1, %c0_2] : memref<32x32xf32, #tpu.memory_space<vmem>>, vector<32x32xf32>
    %c0_3 = arith.constant 0 : index
    %c0_4 = arith.constant 0 : index
    %2 = vector.load %arg6[%c0_3, %c0_4] : memref<32x32xf32, #tpu.memory_space<vmem>>, vector<32x32xf32>
    %c0_5 = arith.constant 0 : index
    %c0_6 = arith.constant 0 : index
    %3 = vector.load %arg0[%c0_5, %c0_6] : memref<64x4xf32, #tpu.memory_space<vmem>>, vector<64x4xf32>
    %c0_7 = arith.constant 0 : index
    %c0_8 = arith.constant 0 : index
    %4 = vector.load %arg2[%c0_7, %c0_8] : memref<4x96xf32, #tpu.memory_space<vmem>>, vector<4x96xf32>
    %cst = arith.constant dense<0.000000e+00> : vector<64x96xf32>
    %5 = tpu.matmul %3, %4, %cst {dimension_numbers = #tpu.dot_dimension_numbers<[1], [0], [0], [1], [0, 0, 1, 1], [], []>} : vector<64x4xf32>, vector<4x96xf32>, vector<64x96xf32> -> vector<64x96xf32>
    %c0_9 = arith.constant 0 : index
    %c0_10 = arith.constant 0 : index
    %6 = vector.load %arg3[%c0_9, %c0_10] : memref<1x96xf32, #tpu.memory_space<vmem>>, vector<1x96xf32>
    %7 = vector.broadcast %6 : vector<1x96xf32> to vector<64x96xf32>
    %8 = arith.addf %5, %7 : vector<64x96xf32>
    %9 = vector.extract_strided_slice %8 {offsets = [0, 0], sizes = [64, 32], strides = [1, 1]} : vector<64x96xf32> to vector<64x32xf32>
    %10 = vector.extract_strided_slice %8 {offsets = [0, 32], sizes = [64, 32], strides = [1, 1]} : vector<64x96xf32> to vector<64x32xf32>
    %11 = vector.extract_strided_slice %8 {offsets = [0, 64], sizes = [64, 32], strides = [1, 1]} : vector<64x96xf32> to vector<64x32xf32>
    %c0_11 = arith.constant 0 : index
    %c0_12 = arith.constant 0 : index
    %c0_13 = arith.constant 0 : index
    %12 = vector.load %arg1[%c0_11, %c0_12, %c0_13] : memref<1x8x32xf32, #tpu.memory_space<vmem>>, vector<1x8x32xf32>
    %13 = vector.shape_cast %12 : vector<1x8x32xf32> to vector<8x32xf32>
    %14 = vector.extract_strided_slice %9 {offsets = [0, 0], sizes = [8, 32], strides = [1, 1]} : vector<64x32xf32> to vector<8x32xf32>
    %15 = vector.extract_strided_slice %10 {offsets = [0, 0], sizes = [8, 32], strides = [1, 1]} : vector<64x32xf32> to vector<8x32xf32>
    %16 = vector.extract_strided_slice %11 {offsets = [0, 0], sizes = [8, 32], strides = [1, 1]} : vector<64x32xf32> to vector<8x32xf32>
    %cst_14 = arith.constant dense<0.000000e+00> : vector<8x32xf32>
    %17 = tpu.matmul %13, %0, %cst_14 {dimension_numbers = #tpu.dot_dimension_numbers<[1], [0], [0], [1], [0, 0, 1, 1], [], []>} : vector<8x32xf32>, vector<32x32xf32>, vector<8x32xf32> -> vector<8x32xf32>
    %18 = arith.addf %14, %17 : vector<8x32xf32>
    %19 = arith.negf %18 : vector<8x32xf32>
    %20 = math.exp %19 : vector<8x32xf32>
    %cst_15 = arith.constant 1.000000e+00 : f32
    %21 = vector.broadcast %cst_15 : f32 to vector<8x32xf32>
    %22 = arith.addf %21, %20 : vector<8x32xf32>
    %23 = arith.divf %21, %22 : vector<8x32xf32>
    %cst_16 = arith.constant dense<0.000000e+00> : vector<8x32xf32>
    %24 = tpu.matmul %13, %1, %cst_16 {dimension_numbers = #tpu.dot_dimension_numbers<[1], [0], [0], [1], [0, 0, 1, 1], [], []>} : vector<8x32xf32>, vector<32x32xf32>, vector<8x32xf32> -> vector<8x32xf32>
    %25 = arith.addf %15, %24 : vector<8x32xf32>
    %26 = arith.negf %25 : vector<8x32xf32>
    %27 = math.exp %26 : vector<8x32xf32>
    %cst_17 = arith.constant 1.000000e+00 : f32
    %28 = vector.broadcast %cst_17 : f32 to vector<8x32xf32>
    %29 = arith.addf %28, %27 : vector<8x32xf32>
    %30 = arith.divf %28, %29 : vector<8x32xf32>
    %31 = arith.mulf %30, %13 : vector<8x32xf32>
    %cst_18 = arith.constant dense<0.000000e+00> : vector<8x32xf32>
    %32 = tpu.matmul %31, %2, %cst_18 {dimension_numbers = #tpu.dot_dimension_numbers<[1], [0], [0], [1], [0, 0, 1, 1], [], []>} : vector<8x32xf32>, vector<32x32xf32>, vector<8x32xf32> -> vector<8x32xf32>
    %33 = arith.addf %16, %32 : vector<8x32xf32>
    %34 = math.tanh %33 : vector<8x32xf32>
    %35 = arith.subf %13, %34 : vector<8x32xf32>
    %36 = arith.mulf %23, %35 : vector<8x32xf32>
    %37 = arith.addf %34, %36 : vector<8x32xf32>
    %38 = vector.extract_strided_slice %9 {offsets = [8, 0], sizes = [8, 32], strides = [1, 1]} : vector<64x32xf32> to vector<8x32xf32>
    %39 = vector.extract_strided_slice %10 {offsets = [8, 0], sizes = [8, 32], strides = [1, 1]} : vector<64x32xf32> to vector<8x32xf32>
    %40 = vector.extract_strided_slice %11 {offsets = [8, 0], sizes = [8, 32], strides = [1, 1]} : vector<64x32xf32> to vector<8x32xf32>
    %cst_19 = arith.constant dense<0.000000e+00> : vector<8x32xf32>
    %41 = tpu.matmul %37, %0, %cst_19 {dimension_numbers = #tpu.dot_dimension_numbers<[1], [0], [0], [1], [0, 0, 1, 1], [], []>} : vector<8x32xf32>, vector<32x32xf32>, vector<8x32xf32> -> vector<8x32xf32>
    %42 = arith.addf %38, %41 : vector<8x32xf32>
    %43 = arith.negf %42 : vector<8x32xf32>
    %44 = math.exp %43 : vector<8x32xf32>
    %cst_20 = arith.constant 1.000000e+00 : f32
    %45 = vector.broadcast %cst_20 : f32 to vector<8x32xf32>
    %46 = arith.addf %45, %44 : vector<8x32xf32>
    %47 = arith.divf %45, %46 : vector<8x32xf32>
    %cst_21 = arith.constant dense<0.000000e+00> : vector<8x32xf32>
    %48 = tpu.matmul %37, %1, %cst_21 {dimension_numbers = #tpu.dot_dimension_numbers<[1], [0], [0], [1], [0, 0, 1, 1], [], []>} : vector<8x32xf32>, vector<32x32xf32>, vector<8x32xf32> -> vector<8x32xf32>
    %49 = arith.addf %39, %48 : vector<8x32xf32>
    %50 = arith.negf %49 : vector<8x32xf32>
    %51 = math.exp %50 : vector<8x32xf32>
    %cst_22 = arith.constant 1.000000e+00 : f32
    %52 = vector.broadcast %cst_22 : f32 to vector<8x32xf32>
    %53 = arith.addf %52, %51 : vector<8x32xf32>
    %54 = arith.divf %52, %53 : vector<8x32xf32>
    %55 = arith.mulf %54, %37 : vector<8x32xf32>
    %cst_23 = arith.constant dense<0.000000e+00> : vector<8x32xf32>
    %56 = tpu.matmul %55, %2, %cst_23 {dimension_numbers = #tpu.dot_dimension_numbers<[1], [0], [0], [1], [0, 0, 1, 1], [], []>} : vector<8x32xf32>, vector<32x32xf32>, vector<8x32xf32> -> vector<8x32xf32>
    %57 = arith.addf %40, %56 : vector<8x32xf32>
    %58 = math.tanh %57 : vector<8x32xf32>
    %59 = arith.subf %37, %58 : vector<8x32xf32>
    %60 = arith.mulf %47, %59 : vector<8x32xf32>
    %61 = arith.addf %58, %60 : vector<8x32xf32>
    %62 = vector.extract_strided_slice %9 {offsets = [16, 0], sizes = [8, 32], strides = [1, 1]} : vector<64x32xf32> to vector<8x32xf32>
    %63 = vector.extract_strided_slice %10 {offsets = [16, 0], sizes = [8, 32], strides = [1, 1]} : vector<64x32xf32> to vector<8x32xf32>
    %64 = vector.extract_strided_slice %11 {offsets = [16, 0], sizes = [8, 32], strides = [1, 1]} : vector<64x32xf32> to vector<8x32xf32>
    %cst_24 = arith.constant dense<0.000000e+00> : vector<8x32xf32>
    %65 = tpu.matmul %61, %0, %cst_24 {dimension_numbers = #tpu.dot_dimension_numbers<[1], [0], [0], [1], [0, 0, 1, 1], [], []>} : vector<8x32xf32>, vector<32x32xf32>, vector<8x32xf32> -> vector<8x32xf32>
    %66 = arith.addf %62, %65 : vector<8x32xf32>
    %67 = arith.negf %66 : vector<8x32xf32>
    %68 = math.exp %67 : vector<8x32xf32>
    %cst_25 = arith.constant 1.000000e+00 : f32
    %69 = vector.broadcast %cst_25 : f32 to vector<8x32xf32>
    %70 = arith.addf %69, %68 : vector<8x32xf32>
    %71 = arith.divf %69, %70 : vector<8x32xf32>
    %cst_26 = arith.constant dense<0.000000e+00> : vector<8x32xf32>
    %72 = tpu.matmul %61, %1, %cst_26 {dimension_numbers = #tpu.dot_dimension_numbers<[1], [0], [0], [1], [0, 0, 1, 1], [], []>} : vector<8x32xf32>, vector<32x32xf32>, vector<8x32xf32> -> vector<8x32xf32>
    %73 = arith.addf %63, %72 : vector<8x32xf32>
    %74 = arith.negf %73 : vector<8x32xf32>
    %75 = math.exp %74 : vector<8x32xf32>
    %cst_27 = arith.constant 1.000000e+00 : f32
    %76 = vector.broadcast %cst_27 : f32 to vector<8x32xf32>
    %77 = arith.addf %76, %75 : vector<8x32xf32>
    %78 = arith.divf %76, %77 : vector<8x32xf32>
    %79 = arith.mulf %78, %61 : vector<8x32xf32>
    %cst_28 = arith.constant dense<0.000000e+00> : vector<8x32xf32>
    %80 = tpu.matmul %79, %2, %cst_28 {dimension_numbers = #tpu.dot_dimension_numbers<[1], [0], [0], [1], [0, 0, 1, 1], [], []>} : vector<8x32xf32>, vector<32x32xf32>, vector<8x32xf32> -> vector<8x32xf32>
    %81 = arith.addf %64, %80 : vector<8x32xf32>
    %82 = math.tanh %81 : vector<8x32xf32>
    %83 = arith.subf %61, %82 : vector<8x32xf32>
    %84 = arith.mulf %71, %83 : vector<8x32xf32>
    %85 = arith.addf %82, %84 : vector<8x32xf32>
    %86 = vector.extract_strided_slice %9 {offsets = [24, 0], sizes = [8, 32], strides = [1, 1]} : vector<64x32xf32> to vector<8x32xf32>
    %87 = vector.extract_strided_slice %10 {offsets = [24, 0], sizes = [8, 32], strides = [1, 1]} : vector<64x32xf32> to vector<8x32xf32>
    %88 = vector.extract_strided_slice %11 {offsets = [24, 0], sizes = [8, 32], strides = [1, 1]} : vector<64x32xf32> to vector<8x32xf32>
    %cst_29 = arith.constant dense<0.000000e+00> : vector<8x32xf32>
    %89 = tpu.matmul %85, %0, %cst_29 {dimension_numbers = #tpu.dot_dimension_numbers<[1], [0], [0], [1], [0, 0, 1, 1], [], []>} : vector<8x32xf32>, vector<32x32xf32>, vector<8x32xf32> -> vector<8x32xf32>
    %90 = arith.addf %86, %89 : vector<8x32xf32>
    %91 = arith.negf %90 : vector<8x32xf32>
    %92 = math.exp %91 : vector<8x32xf32>
    %cst_30 = arith.constant 1.000000e+00 : f32
    %93 = vector.broadcast %cst_30 : f32 to vector<8x32xf32>
    %94 = arith.addf %93, %92 : vector<8x32xf32>
    %95 = arith.divf %93, %94 : vector<8x32xf32>
    %cst_31 = arith.constant dense<0.000000e+00> : vector<8x32xf32>
    %96 = tpu.matmul %85, %1, %cst_31 {dimension_numbers = #tpu.dot_dimension_numbers<[1], [0], [0], [1], [0, 0, 1, 1], [], []>} : vector<8x32xf32>, vector<32x32xf32>, vector<8x32xf32> -> vector<8x32xf32>
    %97 = arith.addf %87, %96 : vector<8x32xf32>
    %98 = arith.negf %97 : vector<8x32xf32>
    %99 = math.exp %98 : vector<8x32xf32>
    %cst_32 = arith.constant 1.000000e+00 : f32
    %100 = vector.broadcast %cst_32 : f32 to vector<8x32xf32>
    %101 = arith.addf %100, %99 : vector<8x32xf32>
    %102 = arith.divf %100, %101 : vector<8x32xf32>
    %103 = arith.mulf %102, %85 : vector<8x32xf32>
    %cst_33 = arith.constant dense<0.000000e+00> : vector<8x32xf32>
    %104 = tpu.matmul %103, %2, %cst_33 {dimension_numbers = #tpu.dot_dimension_numbers<[1], [0], [0], [1], [0, 0, 1, 1], [], []>} : vector<8x32xf32>, vector<32x32xf32>, vector<8x32xf32> -> vector<8x32xf32>
    %105 = arith.addf %88, %104 : vector<8x32xf32>
    %106 = math.tanh %105 : vector<8x32xf32>
    %107 = arith.subf %85, %106 : vector<8x32xf32>
    %108 = arith.mulf %95, %107 : vector<8x32xf32>
    %109 = arith.addf %106, %108 : vector<8x32xf32>
    %110 = vector.extract_strided_slice %9 {offsets = [32, 0], sizes = [8, 32], strides = [1, 1]} : vector<64x32xf32> to vector<8x32xf32>
    %111 = vector.extract_strided_slice %10 {offsets = [32, 0], sizes = [8, 32], strides = [1, 1]} : vector<64x32xf32> to vector<8x32xf32>
    %112 = vector.extract_strided_slice %11 {offsets = [32, 0], sizes = [8, 32], strides = [1, 1]} : vector<64x32xf32> to vector<8x32xf32>
    %cst_34 = arith.constant dense<0.000000e+00> : vector<8x32xf32>
    %113 = tpu.matmul %109, %0, %cst_34 {dimension_numbers = #tpu.dot_dimension_numbers<[1], [0], [0], [1], [0, 0, 1, 1], [], []>} : vector<8x32xf32>, vector<32x32xf32>, vector<8x32xf32> -> vector<8x32xf32>
    %114 = arith.addf %110, %113 : vector<8x32xf32>
    %115 = arith.negf %114 : vector<8x32xf32>
    %116 = math.exp %115 : vector<8x32xf32>
    %cst_35 = arith.constant 1.000000e+00 : f32
    %117 = vector.broadcast %cst_35 : f32 to vector<8x32xf32>
    %118 = arith.addf %117, %116 : vector<8x32xf32>
    %119 = arith.divf %117, %118 : vector<8x32xf32>
    %cst_36 = arith.constant dense<0.000000e+00> : vector<8x32xf32>
    %120 = tpu.matmul %109, %1, %cst_36 {dimension_numbers = #tpu.dot_dimension_numbers<[1], [0], [0], [1], [0, 0, 1, 1], [], []>} : vector<8x32xf32>, vector<32x32xf32>, vector<8x32xf32> -> vector<8x32xf32>
    %121 = arith.addf %111, %120 : vector<8x32xf32>
    %122 = arith.negf %121 : vector<8x32xf32>
    %123 = math.exp %122 : vector<8x32xf32>
    %cst_37 = arith.constant 1.000000e+00 : f32
    %124 = vector.broadcast %cst_37 : f32 to vector<8x32xf32>
    %125 = arith.addf %124, %123 : vector<8x32xf32>
    %126 = arith.divf %124, %125 : vector<8x32xf32>
    %127 = arith.mulf %126, %109 : vector<8x32xf32>
    %cst_38 = arith.constant dense<0.000000e+00> : vector<8x32xf32>
    %128 = tpu.matmul %127, %2, %cst_38 {dimension_numbers = #tpu.dot_dimension_numbers<[1], [0], [0], [1], [0, 0, 1, 1], [], []>} : vector<8x32xf32>, vector<32x32xf32>, vector<8x32xf32> -> vector<8x32xf32>
    %129 = arith.addf %112, %128 : vector<8x32xf32>
    %130 = math.tanh %129 : vector<8x32xf32>
    %131 = arith.subf %109, %130 : vector<8x32xf32>
    %132 = arith.mulf %119, %131 : vector<8x32xf32>
    %133 = arith.addf %130, %132 : vector<8x32xf32>
    %134 = vector.extract_strided_slice %9 {offsets = [40, 0], sizes = [8, 32], strides = [1, 1]} : vector<64x32xf32> to vector<8x32xf32>
    %135 = vector.extract_strided_slice %10 {offsets = [40, 0], sizes = [8, 32], strides = [1, 1]} : vector<64x32xf32> to vector<8x32xf32>
    %136 = vector.extract_strided_slice %11 {offsets = [40, 0], sizes = [8, 32], strides = [1, 1]} : vector<64x32xf32> to vector<8x32xf32>
    %cst_39 = arith.constant dense<0.000000e+00> : vector<8x32xf32>
    %137 = tpu.matmul %133, %0, %cst_39 {dimension_numbers = #tpu.dot_dimension_numbers<[1], [0], [0], [1], [0, 0, 1, 1], [], []>} : vector<8x32xf32>, vector<32x32xf32>, vector<8x32xf32> -> vector<8x32xf32>
    %138 = arith.addf %134, %137 : vector<8x32xf32>
    %139 = arith.negf %138 : vector<8x32xf32>
    %140 = math.exp %139 : vector<8x32xf32>
    %cst_40 = arith.constant 1.000000e+00 : f32
    %141 = vector.broadcast %cst_40 : f32 to vector<8x32xf32>
    %142 = arith.addf %141, %140 : vector<8x32xf32>
    %143 = arith.divf %141, %142 : vector<8x32xf32>
    %cst_41 = arith.constant dense<0.000000e+00> : vector<8x32xf32>
    %144 = tpu.matmul %133, %1, %cst_41 {dimension_numbers = #tpu.dot_dimension_numbers<[1], [0], [0], [1], [0, 0, 1, 1], [], []>} : vector<8x32xf32>, vector<32x32xf32>, vector<8x32xf32> -> vector<8x32xf32>
    %145 = arith.addf %135, %144 : vector<8x32xf32>
    %146 = arith.negf %145 : vector<8x32xf32>
    %147 = math.exp %146 : vector<8x32xf32>
    %cst_42 = arith.constant 1.000000e+00 : f32
    %148 = vector.broadcast %cst_42 : f32 to vector<8x32xf32>
    %149 = arith.addf %148, %147 : vector<8x32xf32>
    %150 = arith.divf %148, %149 : vector<8x32xf32>
    %151 = arith.mulf %150, %133 : vector<8x32xf32>
    %cst_43 = arith.constant dense<0.000000e+00> : vector<8x32xf32>
    %152 = tpu.matmul %151, %2, %cst_43 {dimension_numbers = #tpu.dot_dimension_numbers<[1], [0], [0], [1], [0, 0, 1, 1], [], []>} : vector<8x32xf32>, vector<32x32xf32>, vector<8x32xf32> -> vector<8x32xf32>
    %153 = arith.addf %136, %152 : vector<8x32xf32>
    %154 = math.tanh %153 : vector<8x32xf32>
    %155 = arith.subf %133, %154 : vector<8x32xf32>
    %156 = arith.mulf %143, %155 : vector<8x32xf32>
    %157 = arith.addf %154, %156 : vector<8x32xf32>
    %158 = vector.extract_strided_slice %9 {offsets = [48, 0], sizes = [8, 32], strides = [1, 1]} : vector<64x32xf32> to vector<8x32xf32>
    %159 = vector.extract_strided_slice %10 {offsets = [48, 0], sizes = [8, 32], strides = [1, 1]} : vector<64x32xf32> to vector<8x32xf32>
    %160 = vector.extract_strided_slice %11 {offsets = [48, 0], sizes = [8, 32], strides = [1, 1]} : vector<64x32xf32> to vector<8x32xf32>
    %cst_44 = arith.constant dense<0.000000e+00> : vector<8x32xf32>
    %161 = tpu.matmul %157, %0, %cst_44 {dimension_numbers = #tpu.dot_dimension_numbers<[1], [0], [0], [1], [0, 0, 1, 1], [], []>} : vector<8x32xf32>, vector<32x32xf32>, vector<8x32xf32> -> vector<8x32xf32>
    %162 = arith.addf %158, %161 : vector<8x32xf32>
    %163 = arith.negf %162 : vector<8x32xf32>
    %164 = math.exp %163 : vector<8x32xf32>
    %cst_45 = arith.constant 1.000000e+00 : f32
    %165 = vector.broadcast %cst_45 : f32 to vector<8x32xf32>
    %166 = arith.addf %165, %164 : vector<8x32xf32>
    %167 = arith.divf %165, %166 : vector<8x32xf32>
    %cst_46 = arith.constant dense<0.000000e+00> : vector<8x32xf32>
    %168 = tpu.matmul %157, %1, %cst_46 {dimension_numbers = #tpu.dot_dimension_numbers<[1], [0], [0], [1], [0, 0, 1, 1], [], []>} : vector<8x32xf32>, vector<32x32xf32>, vector<8x32xf32> -> vector<8x32xf32>
    %169 = arith.addf %159, %168 : vector<8x32xf32>
    %170 = arith.negf %169 : vector<8x32xf32>
    %171 = math.exp %170 : vector<8x32xf32>
    %cst_47 = arith.constant 1.000000e+00 : f32
    %172 = vector.broadcast %cst_47 : f32 to vector<8x32xf32>
    %173 = arith.addf %172, %171 : vector<8x32xf32>
    %174 = arith.divf %172, %173 : vector<8x32xf32>
    %175 = arith.mulf %174, %157 : vector<8x32xf32>
    %cst_48 = arith.constant dense<0.000000e+00> : vector<8x32xf32>
    %176 = tpu.matmul %175, %2, %cst_48 {dimension_numbers = #tpu.dot_dimension_numbers<[1], [0], [0], [1], [0, 0, 1, 1], [], []>} : vector<8x32xf32>, vector<32x32xf32>, vector<8x32xf32> -> vector<8x32xf32>
    %177 = arith.addf %160, %176 : vector<8x32xf32>
    %178 = math.tanh %177 : vector<8x32xf32>
    %179 = arith.subf %157, %178 : vector<8x32xf32>
    %180 = arith.mulf %167, %179 : vector<8x32xf32>
    %181 = arith.addf %178, %180 : vector<8x32xf32>
    %182 = vector.extract_strided_slice %9 {offsets = [56, 0], sizes = [8, 32], strides = [1, 1]} : vector<64x32xf32> to vector<8x32xf32>
    %183 = vector.extract_strided_slice %10 {offsets = [56, 0], sizes = [8, 32], strides = [1, 1]} : vector<64x32xf32> to vector<8x32xf32>
    %184 = vector.extract_strided_slice %11 {offsets = [56, 0], sizes = [8, 32], strides = [1, 1]} : vector<64x32xf32> to vector<8x32xf32>
    %cst_49 = arith.constant dense<0.000000e+00> : vector<8x32xf32>
    %185 = tpu.matmul %181, %0, %cst_49 {dimension_numbers = #tpu.dot_dimension_numbers<[1], [0], [0], [1], [0, 0, 1, 1], [], []>} : vector<8x32xf32>, vector<32x32xf32>, vector<8x32xf32> -> vector<8x32xf32>
    %186 = arith.addf %182, %185 : vector<8x32xf32>
    %187 = arith.negf %186 : vector<8x32xf32>
    %188 = math.exp %187 : vector<8x32xf32>
    %cst_50 = arith.constant 1.000000e+00 : f32
    %189 = vector.broadcast %cst_50 : f32 to vector<8x32xf32>
    %190 = arith.addf %189, %188 : vector<8x32xf32>
    %191 = arith.divf %189, %190 : vector<8x32xf32>
    %cst_51 = arith.constant dense<0.000000e+00> : vector<8x32xf32>
    %192 = tpu.matmul %181, %1, %cst_51 {dimension_numbers = #tpu.dot_dimension_numbers<[1], [0], [0], [1], [0, 0, 1, 1], [], []>} : vector<8x32xf32>, vector<32x32xf32>, vector<8x32xf32> -> vector<8x32xf32>
    %193 = arith.addf %183, %192 : vector<8x32xf32>
    %194 = arith.negf %193 : vector<8x32xf32>
    %195 = math.exp %194 : vector<8x32xf32>
    %cst_52 = arith.constant 1.000000e+00 : f32
    %196 = vector.broadcast %cst_52 : f32 to vector<8x32xf32>
    %197 = arith.addf %196, %195 : vector<8x32xf32>
    %198 = arith.divf %196, %197 : vector<8x32xf32>
    %199 = arith.mulf %198, %181 : vector<8x32xf32>
    %cst_53 = arith.constant dense<0.000000e+00> : vector<8x32xf32>
    %200 = tpu.matmul %199, %2, %cst_53 {dimension_numbers = #tpu.dot_dimension_numbers<[1], [0], [0], [1], [0, 0, 1, 1], [], []>} : vector<8x32xf32>, vector<32x32xf32>, vector<8x32xf32> -> vector<8x32xf32>
    %201 = arith.addf %184, %200 : vector<8x32xf32>
    %202 = math.tanh %201 : vector<8x32xf32>
    %203 = arith.subf %181, %202 : vector<8x32xf32>
    %204 = arith.mulf %191, %203 : vector<8x32xf32>
    %205 = arith.addf %202, %204 : vector<8x32xf32>
    %c0_54 = arith.constant 0 : index
    %c0_55 = arith.constant 0 : index
    %206 = vector.load %arg7[%c0_54, %c0_55] : memref<32x2xf32, #tpu.memory_space<vmem>>, vector<32x2xf32>
    %cst_56 = arith.constant dense<0.000000e+00> : vector<8x2xf32>
    %207 = tpu.matmul %205, %206, %cst_56 {dimension_numbers = #tpu.dot_dimension_numbers<[1], [0], [0], [1], [0, 0, 1, 1], [], []>} : vector<8x32xf32>, vector<32x2xf32>, vector<8x2xf32> -> vector<8x2xf32>
    %c0_57 = arith.constant 0 : index
    %c0_58 = arith.constant 0 : index
    %208 = vector.load %arg8[%c0_57, %c0_58] : memref<1x2xf32, #tpu.memory_space<vmem>>, vector<1x2xf32>
    %209 = vector.broadcast %208 : vector<1x2xf32> to vector<8x2xf32>
    %210 = arith.addf %207, %209 : vector<8x2xf32>
    %cst_59 = arith.constant dense<0xFF800000> : vector<8xf32>
    %211 = vector.multi_reduction <maximumf>, %210, %cst_59 [1] : vector<8x2xf32> to vector<8xf32>
    %212 = vector.shape_cast %211 : vector<8xf32> to vector<8x1xf32>
    %213 = vector.broadcast %212 : vector<8x1xf32> to vector<8x2xf32>
    %214 = arith.subf %210, %213 : vector<8x2xf32>
    %215 = math.exp %214 : vector<8x2xf32>
    %cst_60 = arith.constant dense<0.000000e+00> : vector<8xf32>
    %216 = vector.multi_reduction <add>, %215, %cst_60 [1] : vector<8x2xf32> to vector<8xf32>
    %217 = vector.shape_cast %216 : vector<8xf32> to vector<8x1xf32>
    %218 = vector.broadcast %217 : vector<8x1xf32> to vector<8x2xf32>
    %219 = arith.divf %215, %218 : vector<8x2xf32>
    %c0_61 = arith.constant 0 : index
    %c0_62 = arith.constant 0 : index
    %220 = vector.load %arg9[%c0_61, %c0_62] : memref<8x2xf32, #tpu.memory_space<vmem>>, vector<8x2xf32>
    tpu.vector_store %arg9[%c0_61, %c0_62], %219 {strides = array<i32>} : memref<8x2xf32, #tpu.memory_space<vmem>>, vector<8x2xf32>,
    %c0_63 = arith.constant 0 : index
    %c0_64 = arith.constant 0 : index
    %c0_65 = arith.constant 0 : index
    %221 = vector.load %arg10[%c0_63, %c0_64, %c0_65] : memref<1x8x32xf32, #tpu.memory_space<vmem>>, vector<1x8x32xf32>
    %222 = vector.shape_cast %221 : vector<1x8x32xf32> to vector<8x32xf32>
    %223 = vector.shape_cast %205 : vector<8x32xf32> to vector<1x8x32xf32>
    tpu.vector_store %arg10[%c0_63, %c0_64, %c0_65], %223 {strides = array<i32>} : memref<1x8x32xf32, #tpu.memory_space<vmem>>, vector<1x8x32xf32>,
    return
  }
}

</mosaic_0001>

<bundles_post_ra>
// kernel: tpu_custom_call.1
= control target key start
LH: loop header
LB: loop body
LE: loop exit
PB: predicated region body
PF: predicated region fallthrough
CT: control target
= control target key end

     0   :  { %vm88_vm0 = vcmask 1043456   ;;  %v3128_v3 = vmov 0.0|0.0   ;;  %vm63_vm1 = vcmask 31744   ;;  %vm3129_vm2 = vmmov 0   ;;  %s3582_s0 = inlined_call_operand.vmem [shape: f32[64,4], index: 0, kind: input, shape index: {}]   ;;  %s3583_s1 = inlined_call_operand.vmem [shape: f32[1,8,32], index: 1, kind: input, shape index: {}]   ;;  %s3584_s2 = inlined_call_operand.vmem [shape: f32[4,96], index: 2, kind: input, shape index: {}]   ;;  %s3585_s3 = inlined_call_operand.vmem [shape: f32[1,96], index: 3, kind: input, shape index: {}]   ;;  %s3586_s4 = inlined_call_operand.vmem [shape: f32[32,32], index: 4, kind: input, shape index: {}]   ;;  %s3587_s5 = inlined_call_operand.vmem [shape: f32[32,32], index: 5, kind: input, shape index: {}]   ;;  %s3588_s6 = inlined_call_operand.vmem [shape: f32[32,32], index: 6, kind: input, shape index: {}]   ;;  %s3589_s7 = inlined_call_operand.vmem [shape: f32[32,2], index: 7, kind: input, shape index: {}]   ;;  %s3590_s8 = inlined_call_operand.vmem [shape: f32[1,2], index: 8, kind: input, shape index: {}]   ;;  %s3591_s9 = inlined_call_operand.vmem [shape: f32[8,2], index: 9, kind: output, shape index: {0}]   ;;  %s3592_s10 = inlined_call_operand.hbm [shape: f32[1,8,32], index: 10, kind: output, shape index: {1}]  }
   0x1   :  { %v35_v0 = vld [vmem:[%s3586_s4] sm:$0xff]  ;;  %v36_v1 = vld [vmem:[%s3586_s4 + $0x8] sm:$0xff]  ;;  %2863 = vmatprep.subr.bf16.mxu1 %v3128_v3  ;;  %v37_v6 = vld [vmem:[%s3586_s4 + $0x10] sm:$0xff]  ;;  %v3130_v10 = vmov 0.0  }
   0x2   :  { %v55_v2 = vld [vmem:[%s3584_s2] sm:$0xf]  ;;  %v3200_v4 = vpack.c.bf16 %v36_v1, %v35_v0  ;;  %v38_v7 = vld [vmem:[%s3586_s4 + $0x18] sm:$0xff]  ;;  %v48_v8 = vld [vmem:[%s3582_s0 + $0x8] sm:$0xff]  ;;  %2596 = vmatprep.mubr.msk.f32.mxu1 %vm3129_vm2, %v3130_v10 }
   0x3   :  { %2574 = vmatprep.subr.msk.mxu0 %vm88_vm0, %v55_v2  ;;  %v47_v5 = vld [vmem:[%s3582_s0] sm:$0xff]  ;;  %v3216_v9 = vpack.c.bf16 %v38_v7, %v37_v6  ;;  %v40_v12 = vld [vmem:[%s3587_s5 + $0x8] sm:$0xff] }
   0x4   :  { %2575 = vmatpush3.msk.msra.mxu0 %vm88_vm0, %v55_v2  ;;  %2576 = vmatprep.mubr.msk.f32.mxu0 %vm63_vm1, %v47_v5  ;;  %v39_v11 = vld [vmem:[%s3587_s5] sm:$0xff] }
   0x5   :  { %2865 = vmatpush3.bf16.msra.mxu1 %v3200_v4  ;;  %2577 = vmatmul.mubr.msk.f32.vlgmr.msra.gmra.mrb[0].mxu0 %vm63_vm1, %v48_v8 }
   0x6   :  { %2866 = vmatprep.subr.bf16.mxu1 %v3128_v3 }
   0x7   :  { %16 = vsyncpa [#allocation3], 0  ;;  %2875 = vmatprep.subr.bf16.mxu0 %v3128_v3  ;;  %v3233_v13 = vld [vmem:[%s3583_s1] sm:$0xff]  ;;  %vm198_vm3 = vcmask 261120   ;;  %v3235_v14 = vpack.c.bf16 %v40_v12, %v39_v11  ;;  %v41_v15 = vld [vmem:[%s3587_s5 + $0x10] sm:$0xff]  ;;  %s3131_s1 = smov 32  }
   0x8   :  { %v42_v16 = vld [vmem:[%s3587_s5 + $0x18] sm:$0xff]  ;;  %v43_v24 = vld [vmem:[%s3588_s6] sm:$0xff]  ;;  %v44_v25 = vld [vmem:[%s3588_s6 + $0x8] sm:$0xff]  ;;  %vm2355_vm4 = vcmask 15360   ;;  %s3134_s20 = smov [#allocation2]  }
   0x9   :  { %2868 = vmatpush3.bf16.msra.mxu1 %v3216_v9  ;;  %v3247_v17 = vpack.c.bf16 %v42_v16, %v41_v15  ;;  %v49_v26 = vld [vmem:[%s3582_s0 + $0x10] sm:$0xff]  ;;  %v3278_v27 = vpack.c.bf16 %v44_v25, %v43_v24  ;;  %v50_v28 = vld [vmem:[%s3582_s0 + $0x18] sm:$0xff]  ;;  %v51_v29 = vld [vmem:[%s3582_s0 + $0x20] sm:$0xff]  ;;  %s2378_s21 = sshll.u32 %s3134_s20, 4  ;;  %s2379_s21 = int_to_ptr.vmem [resolvable:$true] %s2378_s21 }
   0xa   :  { %2869 = vmatprep.subr.bf16.mxu1 %v3128_v3  ;;  %2579 = vmatprep.mubr.msk.f32.mxu0 %vm63_vm1, %v49_v26  ;;  %v45_v30 = vld [vmem:[%s3588_s6 + $0x10] sm:$0xff]  ;;  %v46_v31 = vld [vmem:[%s3588_s6 + $0x18] sm:$0xff]  ;;  %v52_v32 = vld [vmem:[%s3582_s0 + $0x28] sm:$0xff]  ;;  %s3104_s22 = scalar_lea.vmem %s2379_s21, 128  ;;  %p3109_p1 = scmp.lt.s32.totalorder %s2379_s21, %s2379_s21 }
   0xb   :  { %2580 = vmatmul.mubr.msk.f32.gmra.mrb[2].mxu0 %vm63_vm1, %v50_v28  ;;  %v3299_v33 = vpack.c.bf16 %v46_v31, %v45_v30  ;;  %v53_v34 = vld [vmem:[%s3582_s0 + $0x30] sm:$0xff]  ;;  %v54_v35 = vld [vmem:[%s3582_s0 + $0x38] sm:$0xff]  ;;  %v3318_v36 = vld [vmem:[%s3585_s3] ss:$0 sm:$0xff]  ;;  %s3132_s0 = smov 96   ;;  %s3133_s3 = smov 64  }
   0xc   :  { %2597 = vmatmul.mubr.msk.f32.vlgmr.msra.gmra.mrb[0].mxu1 %vm198_vm3, %v3233_v13  ;;  %2877 = vmatpush3.bf16.msra.mxu0 %v3278_v27  ;;  %p3105_p0 = scmp.ne.s32.totalorder %s2379_s21, %s3104_s22  ;;  %p3110_p2 = scmp.lt.s32.totalorder %s3104_s22, %s3104_s22 }
   0xd   :  { %2871 = vmatpush3.bf16.msra.mxu1 %v3235_v14  ;;  %2607 = vmatprep.mubr.msk.f32.mxu1 %vm3129_vm2, %v3130_v10 }
   0xe   :  { %2872 = vmatprep.subr.bf16.mxu1 %v3128_v3  ;;  %2582 = vmatprep.mubr.msk.f32.mxu0 %vm63_vm1, %v51_v29  ;;  %p3111_p3 = por %p3110_p2, %p3109_p1 }
   0xf   :  { %2878 = vmatprep.subr.bf16.mxu0 %v3128_v3  ;;  %2583 = vmatmul.mubr.msk.f32.gmra.mrb[4].mxu0 %vm63_vm1, %v52_v32 }
  0x10   :  { %2880 = vmatpush3.bf16.msra.mxu0 %v3299_v33  ;;  %2585 = vmatprep.mubr.msk.f32.mxu0 %vm63_vm1, %v53_v34  ;;  %p3112_p4 = pnand %p3111_p3, %p3105_p0 }
  0x11   :  { %2874 = vmatpush3.bf16.msra.mxu1 %v3247_v17  ;;  %2887 = vmatprep.subr.bf16.mxu0 %v3128_v3 }
  0x12   :  { %2881 = vmatprep.subr.bf16.mxu1 %v3128_v3 }
  0x13   :  { %2586 = vmatmul.mubr.msk.f32.gmra.mrb[6].mxu0 %vm63_vm1, %v54_v35 }
  0x14   :  { %2608 = vmatmul.mubr.msk.f32.vlgmr.msra.gmra.mrb[2].mxu1 %vm198_vm3, %v3233_v13  ;;  %2618 = vmatprep.mubr.msk.f32.mxu0 %vm3129_vm2, %v3130_v10 }
  0x15   :  { %2883 = vmatpush3.bf16.msra.mxu1 %v3200_v4  ;;  %2629 = vmatprep.mubr.msk.f32.mxu1 %vm3129_vm2, %v3130_v10 }
  0x16   :  { %2884 = vmatprep.subr.bf16.mxu1 %v3128_v3 }
  0x19   :  { %2886 = vmatpush3.bf16.msra.mxu1 %v3216_v9 }
  0x1a   :  { %2893 = vmatprep.subr.bf16.mxu1 %v3128_v3 }
  0xd8   :  { %v3262_v18 = vpop.f32.mrb[0].mxu0 }
  0xd9   :  { %v158_v19 = vpop.f32.mrb[1].mxu0 }
  0xda   :  { %v159_v37 = vadd.f32 %v3318_v36, %v158_v19 }
  0xde   :  { %v3322_v46 = vpop.f32.mrb[2].mxu0 }
  0xdf   :  { %v3264_v20 = vpop.f32.mrb[0].mxu1  ;;  %v3324_v47 = vpop.f32.mrb[3].mxu0 }
  0xe0   :  { %v2598_v21 = vpop.f32.mrb[1].mxu1  ;;  %v272_v58 = vadd.f32 %v3264_v20, %v159_v37 }
  0xe2   :  { %v3326_v48 = vpop.f32.mrb[4].mxu0  ;;  %v2399_v59 = vmul.f32 -1.442695, %v272_v58 }
  0xe3   :  { %v3328_v49 = vpop.f32.mrb[5].mxu0 }
  0xe6   :  { %v3330_v50 = vpop.f32.mrb[6].mxu0 }
  0xe7   :  { %v345_v22 = vpop.f32.mrb[2].mxu1  ;;  %v3332_v51 = vpop.f32.mrb[7].mxu0 }
  0xe8   :  { %350 = vrot.lane.b32.xlu0 %v345_v22, %s3131_s1  ;;  %v2609_v23 = vpop.f32.mrb[3].mxu1 }
  0xec   :  { %360 = vrot.lane.b32.xlu0 %v3233_v13, %s3131_s1 }
 0x15a   :  { %v351_v38 = vpop.permute.xlu0 %350 }
 0x15b   :  { %v353_v39 = vadd.f32 %v351_v38, %v159_v37 }
 0x15d   :  { %v2401_v40 = vmul.f32 -1.442695, %v353_v39 }
 0x15e   :  { %v361_v43 = vpop.permute.xlu0 %360 }
 0x15f   :  { %3020 = vpow2.f32 %v2401_v40 }
 0x169   :  { %v3021_v41 = vpop.eup %3020 }
 0x16a   :  { %v357_v42 = vadd.f32 1.0, %v3021_v41 }
 0x16c   :  { %3022 = vrcp.f32 %v357_v42 }
 0x176   :  { %v3023_v44 = vpop.eup %3022 }
 0x177   :  { %v363_v45 = vmul.f32 %v3023_v44, %v361_v43 }
 0x179   :  { %365 = vrot.lane.b32.xlu1 %v363_v45, %s3132_s0 }
 0x1eb   :  { %v366_v52 = vpop.permute.xlu1 %365 }
 0x1ec   :  { %2619 = vmatmul.mubr.msk.f32.vlgmr.msra.gmra.mrb[8].mxu0 %vm198_vm3, %v366_v52 }
 0x1ed   :  { %2889 = vmatpush3.bf16.msra.mxu0 %v3235_v14  ;;  %2640 = vmatprep.mubr.msk.f32.mxu0 %vm3129_vm2, %v3130_v10 }
 0x1ee   :  { %2890 = vmatprep.subr.bf16.mxu0 %v3128_v3 }
 0x1f1   :  { %2892 = vmatpush3.bf16.msra.mxu0 %v3247_v17 }
 0x1f2   :  { %2899 = vmatprep.subr.bf16.mxu0 %v3128_v3 }
 0x2bf   :  { %v435_v53 = vpop.f32.mrb[8].mxu0 }
 0x2c0   :  { %440 = vrot.lane.b32.xlu1 %v435_v53, %s3133_s3  ;;  %v2620_v54 = vpop.f32.mrb[9].mxu0 }
 0x2c1   :  { %v169_v54 = vadd.f32 %v3318_v36, %v3324_v47 }
 0x332   :  { %v441_v55 = vpop.permute.xlu1 %440 }
 0x333   :  { %v443_v56 = vadd.f32 %v441_v55, %v159_v37 }
 0x335   :  { %3024 = vtanh.f32 %v443_v56 }
 0x336   :  { %3026 = vpow2.f32 %v2399_v59 }
 0x33f   :  { %v3025_v57 = vpop.eup %3024 }
 0x340   :  { %446 = vrot.lane.b32.xlu0 %v3025_v57, %s3133_s3  ;;  %v3027_v60 = vpop.eup %3026 }
 0x341   :  { %v276_v61 = vadd.f32 1.0, %v3027_v60 }
 0x343   :  { %3028 = vrcp.f32 %v276_v61 }
 0x34d   :  { %v3029_v0 = vpop.eup %3028 }
 0x3b2   :  { %v447_v62 = vpop.permute.xlu0 %446 }
 0x3b3   :  { %v449_v63 = vsub.f32 %v3233_v13, %v447_v62  ;;  %v164_v13 = vadd.f32 %v3262_v18, %v3318_v36 }
 0x3b5   :  { %v450_v1 = vmul.f32 %v3029_v0, %v449_v63 }
 0x3b7   :  { %452 = vrot.lane.b32.xlu1 %v450_v1, %s3133_s3 }
 0x429   :  { %v453_v2 = vpop.permute.xlu1 %452 }
 0x42a   :  { %v455_v5 = vadd.f32 %v3025_v57, %v453_v2 }
 0x42c   :  { %457 = vrot.lane.b32.xlu0 %v455_v5, %s3133_s3 }
 0x430   :  { %619 = vrot.lane.b32.xlu0 %v455_v5, %s3132_s0 }
 0x49e   :  { %v458_v6 = vpop.permute.xlu0 %457 }
 0x49f   :  { %2630 = vmatmul.mubr.msk.f32.vlgmr.msra.gmra.mrb[4].mxu1 %vm198_vm3, %v458_v6  ;;  %2641 = vmatmul.mubr.msk.f32.vlgmr.msra.gmra.mrb[10].mxu0 %vm198_vm3, %v458_v6 }
 0x4a0   :  { %2895 = vmatpush3.bf16.msra.mxu1 %v3278_v27  ;;  %2651 = vmatprep.mubr.msk.f32.mxu1 %vm3129_vm2, %v3130_v10 }
 0x4a1   :  { %2896 = vmatprep.subr.bf16.mxu1 %v3128_v3  ;;  %2901 = vmatpush3.bf16.msra.mxu0 %v3200_v4 }
 0x4a2   :  { %2902 = vmatprep.subr.bf16.mxu0 %v3128_v3  ;;  %2662 = vmatprep.mubr.msk.f32.mxu0 %vm3129_vm2, %v3130_v10  ;;  %v620_v23 = vpop.permute.xlu0 %619 }
 0x4a4   :  { %2898 = vmatpush3.bf16.msra.mxu1 %v3299_v33 }
 0x4a5   :  { %2905 = vmatprep.subr.bf16.mxu1 %v3128_v3  ;;  %2904 = vmatpush3.bf16.msra.mxu0 %v3216_v9 }
 0x4a6   :  { %2911 = vmatprep.subr.bf16.mxu0 %v3128_v3 }
 0x572   :  { %v527_v7 = vpop.f32.mrb[4].mxu1  ;;  %v604_v8 = vpop.f32.mrb[10].mxu0 }
 0x573   :  { %609 = vrot.lane.b32.xlu1 %v604_v8, %s3131_s1  ;;  %v2631_v11 = vpop.f32.mrb[5].mxu1  ;;  %v2642_v12 = vpop.f32.mrb[11].mxu0  ;;  %v531_v32 = vadd.f32 %v527_v7, %v164_v13 }
 0x575   :  { %v2404_v34 = vmul.f32 -1.442695, %v531_v32 }
 0x5e5   :  { %v610_v15 = vpop.permute.xlu1 %609 }
 0x5e6   :  { %v612_v16 = vadd.f32 %v610_v15, %v164_v13 }
 0x5e8   :  { %v2406_v19 = vmul.f32 -1.442695, %v612_v16 }
 0x5ea   :  { %3030 = vpow2.f32 %v2406_v19 }
 0x5f4   :  { %v3031_v20 = vpop.eup %3030 }
 0x5f5   :  { %v616_v21 = vadd.f32 1.0, %v3031_v20 }
 0x5f7   :  { %3032 = vrcp.f32 %v616_v21 }
 0x601   :  { %v3033_v22 = vpop.eup %3032 }
 0x602   :  { %v622_v24 = vmul.f32 %v3033_v22, %v620_v23 }
 0x604   :  { %624 = vrot.lane.b32.xlu1 %v622_v24, %s3132_s0 }
 0x676   :  { %v625_v25 = vpop.permute.xlu1 %624 }
 0x677   :  { %2652 = vmatmul.mubr.msk.f32.vlgmr.msra.gmra.mrb[6].mxu1 %vm198_vm3, %v625_v25 }
 0x678   :  { %2907 = vmatpush3.bf16.msra.mxu1 %v3235_v14  ;;  %2673 = vmatprep.mubr.msk.f32.mxu1 %vm3129_vm2, %v3130_v10 }
 0x679   :  { %2908 = vmatprep.subr.bf16.mxu1 %v3128_v3 }
 0x67c   :  { %2910 = vmatpush3.bf16.msra.mxu1 %v3247_v17 }
 0x67d   :  { %2917 = vmatprep.subr.bf16.mxu1 %v3128_v3 }
 0x74a   :  { %v694_v18 = vpop.f32.mrb[6].mxu1 }
 0x74b   :  { %699 = vrot.lane.b32.xlu0 %v694_v18, %s3133_s3  ;;  %v2653_v26 = vpop.f32.mrb[7].mxu1  ;;  %v174_v18 = vadd.f32 %v3322_v46, %v3318_v36 }
 0x7bd   :  { %v700_v28 = vpop.permute.xlu0 %699 }
 0x7be   :  { %v702_v29 = vadd.f32 %v700_v28, %v164_v13 }
 0x7c0   :  { %3034 = vtanh.f32 %v702_v29 }
 0x7c1   :  { %3036 = vpow2.f32 %v2404_v34 }
 0x7ca   :  { %v3035_v30 = vpop.eup %3034 }
 0x7cb   :  { %v704_v31 = vsub.f32 %v455_v5, %v3035_v30  ;;  %v3037_v35 = vpop.eup %3036 }
 0x7cc   :  { %v535_v37 = vadd.f32 1.0, %v3037_v35 }
 0x7cd   :  { %706 = vrot.lane.b32.xlu1 %v704_v31, %s3133_s3 }
 0x7ce   :  { %3038 = vrcp.f32 %v535_v37 }
 0x7d8   :  { %v3039_v38 = vpop.eup %3038 }
 0x83f   :  { %v707_v39 = vpop.permute.xlu1 %706 }
 0x840   :  { %v709_v40 = vmul.f32 %v3039_v38, %v707_v39 }
 0x842   :  { %711 = vrot.lane.b32.xlu0 %v709_v40, %s3133_s3 }
 0x8b4   :  { %v712_v41 = vpop.permute.xlu0 %711 }
 0x8b5   :  { %v714_v42 = vadd.f32 %v3035_v30, %v712_v41 }
 0x8b7   :  { %716 = vrot.lane.b32.xlu1 %v714_v42, %s3133_s3 }
 0x8bb   :  { %878 = vrot.lane.b32.xlu1 %v714_v42, %s3132_s0 }
 0x929   :  { %v717_v43 = vpop.permute.xlu1 %716 }
 0x92a   :  { %2663 = vmatmul.mubr.msk.f32.vlgmr.msra.gmra.mrb[12].mxu0 %vm198_vm3, %v717_v43  ;;  %2674 = vmatmul.mubr.msk.f32.vlgmr.msra.gmra.mrb[8].mxu1 %vm198_vm3, %v717_v43 }
 0x92b   :  { %2913 = vmatpush3.bf16.msra.mxu0 %v3278_v27  ;;  %2684 = vmatprep.mubr.msk.f32.mxu0 %vm3129_vm2, %v3130_v10 }
 0x92c   :  { %2914 = vmatprep.subr.bf16.mxu0 %v3128_v3  ;;  %2919 = vmatpush3.bf16.msra.mxu1 %v3200_v4 }
 0x92d   :  { %2920 = vmatprep.subr.bf16.mxu1 %v3128_v3  ;;  %2695 = vmatprep.mubr.msk.f32.mxu1 %vm3129_vm2, %v3130_v10  ;;  %v879_v61 = vpop.permute.xlu1 %878 }
 0x92f   :  { %2916 = vmatpush3.bf16.msra.mxu0 %v3299_v33 }
 0x930   :  { %2923 = vmatprep.subr.bf16.mxu0 %v3128_v3  ;;  %2922 = vmatpush3.bf16.msra.mxu1 %v3216_v9 }
 0x931   :  { %2929 = vmatprep.subr.bf16.mxu1 %v3128_v3 }
 0x9fd   :  { %v786_v44 = vpop.f32.mrb[12].mxu0  ;;  %v863_v45 = vpop.f32.mrb[8].mxu1 }
 0x9fe   :  { %v2664_v52 = vpop.f32.mrb[13].mxu0  ;;  %868 = vrot.lane.b32.xlu0 %v863_v45, %s3131_s1  ;;  %v2675_v53 = vpop.f32.mrb[9].mxu1  ;;  %v790_v7 = vadd.f32 %v786_v44, %v169_v54 }
 0xa00   :  { %v2409_v8 = vmul.f32 -1.442695, %v790_v7 }
 0xa70   :  { %v869_v55 = vpop.permute.xlu0 %868 }
 0xa71   :  { %v871_v56 = vadd.f32 %v869_v55, %v169_v54 }
 0xa73   :  { %v2411_v57 = vmul.f32 -1.442695, %v871_v56 }
 0xa75   :  { %3040 = vpow2.f32 %v2411_v57 }
 0xa7f   :  { %v3041_v58 = vpop.eup %3040 }
 0xa80   :  { %v875_v59 = vadd.f32 1.0, %v3041_v58 }
 0xa82   :  { %3042 = vrcp.f32 %v875_v59 }
 0xa8c   :  { %v3043_v60 = vpop.eup %3042 }
 0xa8d   :  { %v881_v62 = vmul.f32 %v3043_v60, %v879_v61 }
 0xa8f   :  { %883 = vrot.lane.b32.xlu0 %v881_v62, %s3132_s0 }
 0xb01   :  { %v884_v63 = vpop.permute.xlu0 %883 }
 0xb02   :  { %2685 = vmatmul.mubr.msk.f32.vlgmr.msra.gmra.mrb[14].mxu0 %vm198_vm3, %v884_v63  ;;  %v179_v63 = vadd.f32 %v3318_v36, %v3328_v49 }
 0xb03   :  { %2925 = vmatpush3.bf16.msra.mxu0 %v3235_v14  ;;  %2706 = vmatprep.mubr.msk.f32.mxu0 %vm3129_vm2, %v3130_v10 }
 0xb04   :  { %2926 = vmatprep.subr.bf16.mxu0 %v3128_v3 }
 0xb07   :  { %2928 = vmatpush3.bf16.msra.mxu0 %v3247_v17 }
 0xb08   :  { %2935 = vmatprep.subr.bf16.mxu0 %v3128_v3 }
 0xbd5   :  { %v953_v47 = vpop.f32.mrb[14].mxu0 }
 0xbd6   :  { %958 = vrot.lane.b32.xlu1 %v953_v47, %s3133_s3  ;;  %v2686_v0 = vpop.f32.mrb[15].mxu0 }
 0xc48   :  { %v959_v1 = vpop.permute.xlu1 %958 }
 0xc49   :  { %v961_v2 = vadd.f32 %v959_v1, %v169_v54 }
 0xc4b   :  { %3044 = vtanh.f32 %v961_v2 }
 0xc4c   :  { %3046 = vpow2.f32 %v2409_v8 }
 0xc55   :  { %v3045_v5 = vpop.eup %3044 }
 0xc56   :  { %v963_v6 = vsub.f32 %v714_v42, %v3045_v5  ;;  %v3047_v11 = vpop.eup %3046 }
 0xc57   :  { %v794_v12 = vadd.f32 1.0, %v3047_v11 }
 0xc58   :  { %965 = vrot.lane.b32.xlu0 %v963_v6, %s3133_s3 }
 0xc59   :  { %3048 = vrcp.f32 %v794_v12 }
 0xc63   :  { %v3049_v13 = vpop.eup %3048 }
 0xcca   :  { %v966_v15 = vpop.permute.xlu0 %965 }
 0xccb   :  { %v968_v16 = vmul.f32 %v3049_v13, %v966_v15 }
 0xccd   :  { %970 = vrot.lane.b32.xlu1 %v968_v16, %s3133_s3 }
 0xd3f   :  { %v971_v19 = vpop.permute.xlu1 %970 }
 0xd40   :  { %v973_v20 = vadd.f32 %v3045_v5, %v971_v19 }
 0xd42   :  { %975 = vrot.lane.b32.xlu0 %v973_v20, %s3133_s3 }
 0xd46   :  { %1137 = vrot.lane.b32.xlu0 %v973_v20, %s3132_s0 }
 0xdb4   :  { %v976_v21 = vpop.permute.xlu0 %975 }
 0xdb5   :  { %2696 = vmatmul.mubr.msk.f32.vlgmr.msra.gmra.mrb[10].mxu1 %vm198_vm3, %v976_v21  ;;  %2707 = vmatmul.mubr.msk.f32.vlgmr.msra.gmra.mrb[16].mxu0 %vm198_vm3, %v976_v21 }
 0xdb6   :  { %2931 = vmatpush3.bf16.msra.mxu1 %v3278_v27  ;;  %2717 = vmatprep.mubr.msk.f32.mxu1 %vm3129_vm2, %v3130_v10 }
 0xdb7   :  { %2932 = vmatprep.subr.bf16.mxu1 %v3128_v3  ;;  %2937 = vmatpush3.bf16.msra.mxu0 %v3200_v4 }
 0xdb8   :  { %2938 = vmatprep.subr.bf16.mxu0 %v3128_v3  ;;  %2728 = vmatprep.mubr.msk.f32.mxu0 %vm3129_vm2, %v3130_v10  ;;  %v1138_v34 = vpop.permute.xlu0 %1137 }
 0xdba   :  { %2934 = vmatpush3.bf16.msra.mxu1 %v3299_v33 }
 0xdbb   :  { %2941 = vmatprep.subr.bf16.mxu1 %v3128_v3  ;;  %2940 = vmatpush3.bf16.msra.mxu0 %v3216_v9 }
 0xdbc   :  { %2947 = vmatprep.subr.bf16.mxu0 %v3128_v3 }
 0xe88   :  { %v1045_v22 = vpop.f32.mrb[10].mxu1  ;;  %v1122_v23 = vpop.f32.mrb[16].mxu0 }
 0xe89   :  { %1127 = vrot.lane.b32.xlu1 %v1122_v23, %s3131_s1  ;;  %v2697_v24 = vpop.f32.mrb[11].mxu1  ;;  %v2708_v25 = vpop.f32.mrb[17].mxu0  ;;  %v1049_v43 = vadd.f32 %v1045_v22, %v174_v18 }
 0xe8b   :  { %v2414_v44 = vmul.f32 -1.442695, %v1049_v43 }
 0xefb   :  { %v1128_v26 = vpop.permute.xlu1 %1127 }
 0xefc   :  { %v1130_v28 = vadd.f32 %v1128_v26, %v174_v18 }
 0xefe   :  { %v2416_v29 = vmul.f32 -1.442695, %v1130_v28 }
 0xf00   :  { %3050 = vpow2.f32 %v2416_v29 }
 0xf0a   :  { %v3051_v30 = vpop.eup %3050 }
 0xf0b   :  { %v1134_v31 = vadd.f32 1.0, %v3051_v30 }
 0xf0d   :  { %3052 = vrcp.f32 %v1134_v31 }
 0xf17   :  { %v3053_v32 = vpop.eup %3052 }
 0xf18   :  { %v1140_v35 = vmul.f32 %v3053_v32, %v1138_v34 }
 0xf1a   :  { %1142 = vrot.lane.b32.xlu1 %v1140_v35, %s3132_s0  ;;  %v184_v35 = vadd.f32 %v3326_v48, %v3318_v36 }
 0xf8c   :  { %v1143_v37 = vpop.permute.xlu1 %1142 }
 0xf8d   :  { %2718 = vmatmul.mubr.msk.f32.vlgmr.msra.gmra.mrb[12].mxu1 %vm198_vm3, %v1143_v37 }
 0xf8e   :  { %2943 = vmatpush3.bf16.msra.mxu1 %v3235_v14  ;;  %2739 = vmatprep.mubr.msk.f32.mxu1 %vm3129_vm2, %v3130_v10 }
 0xf8f   :  { %2944 = vmatprep.subr.bf16.mxu1 %v3128_v3 }
 0xf92   :  { %2946 = vmatpush3.bf16.msra.mxu1 %v3247_v17 }
 0xf93   :  { %2953 = vmatprep.subr.bf16.mxu1 %v3128_v3 }
0x1060   :  { %v1212_v46 = vpop.f32.mrb[12].mxu1 }
0x1061   :  { %1217 = vrot.lane.b32.xlu0 %v1212_v46, %s3133_s3  ;;  %v2719_v38 = vpop.f32.mrb[13].mxu1 }
0x10d3   :  { %v1218_v39 = vpop.permute.xlu0 %1217 }
0x10d4   :  { %v1220_v40 = vadd.f32 %v1218_v39, %v174_v18 }
0x10d6   :  { %3054 = vtanh.f32 %v1220_v40 }
0x10d7   :  { %3056 = vpow2.f32 %v2414_v44 }
0x10e0   :  { %v3055_v41 = vpop.eup %3054 }
0x10e1   :  { %v1222_v42 = vsub.f32 %v973_v20, %v3055_v41  ;;  %v3057_v45 = vpop.eup %3056 }
0x10e2   :  { %v1053_v52 = vadd.f32 1.0, %v3057_v45 }
0x10e3   :  { %1224 = vrot.lane.b32.xlu1 %v1222_v42, %s3133_s3 }
0x10e4   :  { %3058 = vrcp.f32 %v1053_v52 }
0x10ee   :  { %v3059_v53 = vpop.eup %3058 }
0x1155   :  { %v1225_v54 = vpop.permute.xlu1 %1224 }
0x1156   :  { %v1227_v55 = vmul.f32 %v3059_v53, %v1225_v54 }
0x1158   :  { %1229 = vrot.lane.b32.xlu0 %v1227_v55, %s3133_s3 }
0x11ca   :  { %v1230_v56 = vpop.permute.xlu0 %1229 }
0x11cb   :  { %v1232_v57 = vadd.f32 %v3055_v41, %v1230_v56 }
0x11cd   :  { %1234 = vrot.lane.b32.xlu1 %v1232_v57, %s3133_s3 }
0x11d1   :  { %1396 = vrot.lane.b32.xlu1 %v1232_v57, %s3132_s0 }
0x123f   :  { %v1235_v58 = vpop.permute.xlu1 %1234 }
0x1240   :  { %2729 = vmatmul.mubr.msk.f32.vlgmr.msra.gmra.mrb[18].mxu0 %vm198_vm3, %v1235_v58  ;;  %2740 = vmatmul.mubr.msk.f32.vlgmr.msra.gmra.mrb[14].mxu1 %vm198_vm3, %v1235_v58 }
0x1241   :  { %2949 = vmatpush3.bf16.msra.mxu0 %v3278_v27  ;;  %2750 = vmatprep.mubr.msk.f32.mxu0 %vm3129_vm2, %v3130_v10 }
0x1242   :  { %2950 = vmatprep.subr.bf16.mxu0 %v3128_v3  ;;  %2955 = vmatpush3.bf16.msra.mxu1 %v3200_v4 }
0x1243   :  { %2956 = vmatprep.subr.bf16.mxu1 %v3128_v3  ;;  %2761 = vmatprep.mubr.msk.f32.mxu1 %vm3129_vm2, %v3130_v10  ;;  %v1397_v7 = vpop.permute.xlu1 %1396 }
0x1245   :  { %2952 = vmatpush3.bf16.msra.mxu0 %v3299_v33 }
0x1246   :  { %2959 = vmatprep.subr.bf16.mxu0 %v3128_v3  ;;  %2958 = vmatpush3.bf16.msra.mxu1 %v3216_v9 }
0x1247   :  { %2965 = vmatprep.subr.bf16.mxu1 %v3128_v3 }
0x1313   :  { %v1304_v59 = vpop.f32.mrb[18].mxu0  ;;  %v1381_v60 = vpop.f32.mrb[14].mxu1 }
0x1314   :  { %v2730_v61 = vpop.f32.mrb[19].mxu0  ;;  %1386 = vrot.lane.b32.xlu0 %v1381_v60, %s3131_s1  ;;  %v2741_v62 = vpop.f32.mrb[15].mxu1  ;;  %v1308_v20 = vadd.f32 %v1304_v59, %v179_v63 }
0x1316   :  { %v2419_v21 = vmul.f32 -1.442695, %v1308_v20 }
0x1386   :  { %v1387_v47 = vpop.permute.xlu0 %1386 }
0x1387   :  { %v1389_v0 = vadd.f32 %v1387_v47, %v179_v63 }
0x1389   :  { %v2421_v1 = vmul.f32 -1.442695, %v1389_v0 }
0x138b   :  { %3060 = vpow2.f32 %v2421_v1 }
0x1395   :  { %v3061_v2 = vpop.eup %3060 }
0x1396   :  { %v1393_v5 = vadd.f32 1.0, %v3061_v2 }
0x1398   :  { %3062 = vrcp.f32 %v1393_v5 }
0x13a2   :  { %v3063_v6 = vpop.eup %3062 }
0x13a3   :  { %v1399_v8 = vmul.f32 %v3063_v6, %v1397_v7 }
0x13a5   :  { %1401 = vrot.lane.b32.xlu0 %v1399_v8, %s3132_s0 }
0x1417   :  { %v1402_v11 = vpop.permute.xlu0 %1401 }
0x1418   :  { %2751 = vmatmul.mubr.msk.f32.vlgmr.msra.gmra.mrb[20].mxu0 %vm198_vm3, %v1402_v11 }
0x1419   :  { %2961 = vmatpush3.bf16.msra.mxu0 %v3235_v14  ;;  %2772 = vmatprep.mubr.msk.f32.mxu0 %vm3129_vm2, %v3130_v10 }
0x141a   :  { %2962 = vmatprep.subr.bf16.mxu0 %v3128_v3 }
0x141d   :  { %2964 = vmatpush3.bf16.msra.mxu0 %v3247_v17 }
0x141e   :  { %2971 = vmatprep.subr.bf16.mxu0 %v3128_v3 }
0x14eb   :  { %v1471_v49 = vpop.f32.mrb[20].mxu0 }
0x14ec   :  { %1476 = vrot.lane.b32.xlu1 %v1471_v49, %s3133_s3  ;;  %v2752_v12 = vpop.f32.mrb[21].mxu0 }
0x155e   :  { %v1477_v13 = vpop.permute.xlu1 %1476 }
0x155f   :  { %v1479_v15 = vadd.f32 %v1477_v13, %v179_v63 }
0x1561   :  { %3064 = vtanh.f32 %v1479_v15 }
0x1562   :  { %3066 = vpow2.f32 %v2419_v21 }
0x156b   :  { %v3065_v16 = vpop.eup %3064 }
0x156c   :  { %v1481_v19 = vsub.f32 %v1232_v57, %v3065_v16  ;;  %v3067_v22 = vpop.eup %3066 }
0x156d   :  { %v1312_v23 = vadd.f32 1.0, %v3067_v22 }
0x156e   :  { %1483 = vrot.lane.b32.xlu0 %v1481_v19, %s3133_s3 }
0x156f   :  { %3068 = vrcp.f32 %v1312_v23 }
0x1579   :  { %v3069_v24 = vpop.eup %3068 }
0x15e0   :  { %v1484_v25 = vpop.permute.xlu0 %1483 }
0x15e1   :  { %v1486_v18 = vmul.f32 %v3069_v24, %v1484_v25 }
0x15e3   :  { %1488 = vrot.lane.b32.xlu1 %v1486_v18, %s3133_s3 }
0x1655   :  { %v1489_v26 = vpop.permute.xlu1 %1488 }
0x1656   :  { %v1491_v28 = vadd.f32 %v3065_v16, %v1489_v26 }
0x1658   :  { %1493 = vrot.lane.b32.xlu0 %v1491_v28, %s3133_s3 }
0x165c   :  { %1655 = vrot.lane.b32.xlu0 %v1491_v28, %s3132_s0 }
0x16ca   :  { %v1494_v29 = vpop.permute.xlu0 %1493 }
0x16cb   :  { %2762 = vmatmul.mubr.msk.f32.vlgmr.msra.gmra.mrb[16].mxu1 %vm198_vm3, %v1494_v29  ;;  %2773 = vmatmul.mubr.msk.f32.vlgmr.msra.gmra.mrb[22].mxu0 %vm198_vm3, %v1494_v29 }
0x16cc   :  { %2967 = vmatpush3.bf16.msra.mxu1 %v3278_v27  ;;  %2783 = vmatprep.mubr.msk.f32.mxu1 %vm3129_vm2, %v3130_v10 }
0x16cd   :  { %2968 = vmatprep.subr.bf16.mxu1 %v3128_v3  ;;  %2973 = vmatpush3.bf16.msra.mxu0 %v3200_v4 }
0x16ce   :  { %2974 = vmatprep.subr.bf16.mxu0 %v3128_v3  ;;  %2794 = vmatprep.mubr.msk.f32.mxu0 %vm3129_vm2, %v3130_v10  ;;  %v1656_v42 = vpop.permute.xlu0 %1655 }
0x16d0   :  { %2970 = vmatpush3.bf16.msra.mxu1 %v3299_v33 }
0x16d1   :  { %2977 = vmatprep.subr.bf16.mxu1 %v3128_v3  ;;  %2976 = vmatpush3.bf16.msra.mxu0 %v3216_v9 }
0x16d2   :  { %2983 = vmatprep.subr.bf16.mxu0 %v3128_v3 }
0x179e   :  { %v1563_v30 = vpop.f32.mrb[16].mxu1  ;;  %v1640_v31 = vpop.f32.mrb[22].mxu0 }
0x179f   :  { %1645 = vrot.lane.b32.xlu1 %v1640_v31, %s3131_s1  ;;  %v2763_v32 = vpop.f32.mrb[17].mxu1  ;;  %v2774_v34 = vpop.f32.mrb[23].mxu0  ;;  %v1567_v56 = vadd.f32 %v1563_v30, %v184_v35 }
0x17a1   :  { %v2424_v57 = vmul.f32 -1.442695, %v1567_v56 }
0x1811   :  { %v1646_v37 = vpop.permute.xlu1 %1645 }
0x1812   :  { %v1648_v46 = vadd.f32 %v1646_v37, %v184_v35 }
0x1814   :  { %v2426_v38 = vmul.f32 -1.442695, %v1648_v46  ;;  %v194_v46 = vadd.f32 %v3330_v50, %v3318_v36 }
0x1816   :  { %3070 = vpow2.f32 %v2426_v38 }
0x1820   :  { %v3071_v39 = vpop.eup %3070 }
0x1821   :  { %v1652_v40 = vadd.f32 1.0, %v3071_v39 }
0x1823   :  { %3072 = vrcp.f32 %v1652_v40 }
0x182d   :  { %v3073_v41 = vpop.eup %3072 }
0x182e   :  { %v1658_v43 = vmul.f32 %v3073_v41, %v1656_v42 }
0x1830   :  { %1660 = vrot.lane.b32.xlu1 %v1658_v43, %s3132_s0 }
0x18a2   :  { %v1661_v44 = vpop.permute.xlu1 %1660 }
0x18a3   :  { %2784 = vmatmul.mubr.msk.f32.vlgmr.msra.gmra.mrb[18].mxu1 %vm198_vm3, %v1661_v44 }
0x18a4   :  { %2979 = vmatpush3.bf16.msra.mxu1 %v3235_v14  ;;  %2805 = vmatprep.mubr.msk.f32.mxu1 %vm3129_vm2, %v3130_v10 }
0x18a5   :  { %2980 = vmatprep.subr.bf16.mxu1 %v3128_v3 }
0x18a8   :  { %2982 = vmatpush3.bf16.msra.mxu1 %v3247_v17 }
0x18a9   :  { %2989 = vmatprep.subr.bf16.mxu1 %v3128_v3 }
0x1976   :  { %v1730_v48 = vpop.f32.mrb[18].mxu1 }
0x1977   :  { %1735 = vrot.lane.b32.xlu0 %v1730_v48, %s3133_s3  ;;  %v2785_v45 = vpop.f32.mrb[19].mxu1 }
0x19e9   :  { %v1736_v52 = vpop.permute.xlu0 %1735 }
0x19ea   :  { %v1738_v53 = vadd.f32 %v1736_v52, %v184_v35 }
0x19ec   :  { %3074 = vtanh.f32 %v1738_v53 }
0x19ed   :  { %3076 = vpow2.f32 %v2424_v57  ;;  %v2269_v57 = vld [vmem:[%s3589_s7] sm:$0xff] }
0x19f6   :  { %v3075_v54 = vpop.eup %3074 }
0x19f7   :  { %v1740_v55 = vsub.f32 %v1491_v28, %v3075_v54  ;;  %v3077_v58 = vpop.eup %3076 }
0x19f8   :  { %v1571_v59 = vadd.f32 1.0, %v3077_v58  ;;  %v2270_v58 = vld [vmem:[%s3589_s7 + $0x8] sm:$0xff] }
0x19f9   :  { %1742 = vrot.lane.b32.xlu1 %v1740_v55, %s3133_s3 }
0x19fa   :  { %3078 = vrcp.f32 %v1571_v59  ;;  %v2271_v59 = vld [vmem:[%s3589_s7 + $0x10] sm:$0xff] }
0x1a04   :  { %v3079_v60 = vpop.eup %3078 }
0x1a6b   :  { %v1743_v61 = vpop.permute.xlu1 %1742 }
0x1a6c   :  { %v1745_v62 = vmul.f32 %v3079_v60, %v1743_v61  ;;  %v3008_v60 = vpack.c.bf16 %v2270_v58, %v2269_v57  ;;  %v2272_v61 = vld [vmem:[%s3589_s7 + $0x18] sm:$0xff] }
0x1a6e   :  { %1747 = vrot.lane.b32.xlu0 %v1745_v62, %s3133_s3  ;;  %v3011_v62 = vpack.c.bf16 %v2272_v61, %v2271_v59 }
0x1ae0   :  { %v1748_v63 = vpop.permute.xlu0 %1747 }
0x1ae1   :  { %v1750_v47 = vadd.f32 %v3075_v54, %v1748_v63 }
0x1ae3   :  { %1752 = vrot.lane.b32.xlu1 %v1750_v47, %s3133_s3 }
0x1ae7   :  { %1914 = vrot.lane.b32.xlu1 %v1750_v47, %s3132_s0 }
0x1b55   :  { %v1753_v0 = vpop.permute.xlu1 %1752 }
0x1b56   :  { %2795 = vmatmul.mubr.msk.f32.vlgmr.msra.gmra.mrb[24].mxu0 %vm198_vm3, %v1753_v0  ;;  %2806 = vmatmul.mubr.msk.f32.vlgmr.msra.gmra.mrb[20].mxu1 %vm198_vm3, %v1753_v0 }
0x1b57   :  { %2985 = vmatpush3.bf16.msra.mxu0 %v3278_v27  ;;  %2816 = vmatprep.mubr.msk.f32.mxu0 %vm3129_vm2, %v3130_v10 }
0x1b58   :  { %2986 = vmatprep.subr.bf16.mxu0 %v3128_v3  ;;  %2991 = vmatpush3.bf16.msra.mxu1 %v3200_v4  ;;  %v189_v4 = vadd.f32 %v3318_v36, %v3332_v51 }
0x1b59   :  { %2992 = vmatprep.subr.bf16.mxu1 %v3128_v3  ;;  %2827 = vmatprep.mubr.msk.f32.mxu1 %vm3129_vm2, %v3130_v10 }
0x1b5b   :  { %2988 = vmatpush3.bf16.msra.mxu0 %v3299_v33 }
0x1b5c   :  { %2995 = vmatprep.subr.bf16.mxu0 %v3128_v3  ;;  %2994 = vmatpush3.bf16.msra.mxu1 %v3216_v9  ;;  %v1915_v9 = vpop.permute.xlu1 %1914 }
0x1b5d   :  { %3001 = vmatprep.subr.bf16.mxu1 %v3128_v3 }
0x1c29   :  { %v1822_v1 = vpop.f32.mrb[24].mxu0  ;;  %v1899_v2 = vpop.f32.mrb[20].mxu1 }
0x1c2a   :  { %v2796_v5 = vpop.f32.mrb[25].mxu0  ;;  %1904 = vrot.lane.b32.xlu0 %v1899_v2, %s3131_s1  ;;  %v2807_v6 = vpop.f32.mrb[21].mxu1 }
0x1c2b   :  { %v2438_v6 = vld [vmem:[%s3590_s8] ss:$0 sm:$0xff] }
0x1c9c   :  { %v1905_v7 = vpop.permute.xlu0 %1904 }
0x1c9d   :  { %v1907_v8 = vadd.f32 %v1905_v7, %v189_v4 }
0x1c9f   :  { %v2431_v11 = vmul.f32 -1.442695, %v1907_v8 }
0x1ca1   :  { %3080 = vpow2.f32 %v2431_v11 }
0x1cab   :  { %v3081_v49 = vpop.eup %3080 }
0x1cac   :  { %v1911_v12 = vadd.f32 1.0, %v3081_v49 }
0x1cae   :  { %3082 = vrcp.f32 %v1911_v12 }
0x1cb8   :  { %v3083_v13 = vpop.eup %3082 }
0x1cb9   :  { %v1917_v15 = vmul.f32 %v3083_v13, %v1915_v9 }
0x1cbb   :  { %1919 = vrot.lane.b32.xlu0 %v1917_v15, %s3132_s0 }
0x1d2d   :  { %v1920_v16 = vpop.permute.xlu0 %1919 }
0x1d2e   :  { %2817 = vmatmul.mubr.msk.f32.vlgmr.msra.gmra.mrb[26].mxu0 %vm198_vm3, %v1920_v16 }
0x1d2f   :  { %2997 = vmatpush3.bf16.msra.mxu0 %v3235_v14  ;;  %2838 = vmatprep.mubr.msk.f32.mxu0 %vm3129_vm2, %v3130_v10  ;;  %v1826_v14 = vadd.f32 %v1822_v1, %v189_v4 }
0x1d30   :  { %2998 = vmatprep.subr.bf16.mxu0 %v3128_v3 }
0x1d31   :  { %v2429_v24 = vmul.f32 -1.442695, %v1826_v14 }
0x1d33   :  { %3000 = vmatpush3.bf16.msra.mxu0 %v3247_v17 }
0x1d34   :  { %3007 = vmatprep.subr.bf16.mxu0 %v3128_v3 }
0x1e01   :  { %v1989_v51 = vpop.f32.mrb[26].mxu0 }
0x1e02   :  { %1994 = vrot.lane.b32.xlu1 %v1989_v51, %s3133_s3  ;;  %v2818_v19 = vpop.f32.mrb[27].mxu0 }
0x1e74   :  { %v1995_v20 = vpop.permute.xlu1 %1994 }
0x1e75   :  { %v1997_v21 = vadd.f32 %v1995_v20, %v189_v4 }
0x1e77   :  { %3084 = vtanh.f32 %v1997_v21 }
0x1e78   :  { %3086 = vpow2.f32 %v2429_v24 }
0x1e81   :  { %v3085_v22 = vpop.eup %3084 }
0x1e82   :  { %v1999_v23 = vsub.f32 %v1750_v47, %v3085_v22  ;;  %v3087_v25 = vpop.eup %3086 }
0x1e83   :  { %v1830_v18 = vadd.f32 1.0, %v3087_v25 }
0x1e84   :  { %2001 = vrot.lane.b32.xlu0 %v1999_v23, %s3133_s3 }
0x1e85   :  { %3088 = vrcp.f32 %v1830_v18 }
0x1e8f   :  { %v3089_v17 = vpop.eup %3088 }
0x1ef6   :  { %v2002_v26 = vpop.permute.xlu0 %2001 }
0x1ef7   :  { %v2004_v28 = vmul.f32 %v3089_v17, %v2002_v26 }
0x1ef9   :  { %2006 = vrot.lane.b32.xlu1 %v2004_v28, %s3133_s3 }
0x1f6b   :  { %v2007_v29 = vpop.permute.xlu1 %2006 }
0x1f6c   :  { %v2009_v30 = vadd.f32 %v3085_v22, %v2007_v29 }
0x1f6e   :  { %2011 = vrot.lane.b32.xlu0 %v2009_v30, %s3133_s3 }
0x1f72   :  { %2173 = vrot.lane.b32.xlu0 %v2009_v30, %s3132_s0 }
0x1fe0   :  { %v2012_v31 = vpop.permute.xlu0 %2011 }
0x1fe1   :  { %2828 = vmatmul.mubr.msk.f32.vlgmr.msra.gmra.mrb[22].mxu1 %vm198_vm3, %v2012_v31  ;;  %2839 = vmatmul.mubr.msk.f32.vlgmr.msra.gmra.mrb[28].mxu0 %vm198_vm3, %v2012_v31 }
0x1fe2   :  { %3003 = vmatpush3.bf16.msra.mxu1 %v3278_v27  ;;  %2849 = vmatprep.mubr.msk.f32.mxu1 %vm3129_vm2, %v3130_v10 }
0x1fe3   :  { %3004 = vmatprep.subr.bf16.mxu1 %v3128_v3  ;;  %2860 = vmatprep.mubr.msk.f32.mxu0 %vm3129_vm2, %v3130_v10 }
0x1fe4   :  { %v2174_v10 = vpop.permute.xlu0 %2173  ;;  %3009 = vmatpush3.bf16.msra.mxu0 %v3008_v60 }
0x1fe5   :  { %3010 = vmatprep.subr.bf16.mxu0 %v3128_v3 }
0x1fe6   :  { %3006 = vmatpush3.bf16.msra.mxu1 %v3299_v33 }
0x1fe8   :  { %3012 = vmatpush3.bf16.msra.mxu0 %v3011_v62 }
0x20b4   :  { %v2081_v32 = vpop.f32.mrb[22].mxu1  ;;  %v2158_v34 = vpop.f32.mrb[28].mxu0 }
0x20b5   :  { %2163 = vrot.lane.b32.xlu1 %v2158_v34, %s3131_s1  ;;  %v2829_v35 = vpop.f32.mrb[23].mxu1  ;;  %v2840_v37 = vpop.f32.mrb[29].mxu0  ;;  %v2085_v53 = vadd.f32 %v2081_v32, %v194_v46 }
0x20b7   :  { %v2434_v54 = vmul.f32 -1.442695, %v2085_v53 }
0x2127   :  { %v2164_v27 = vpop.permute.xlu1 %2163 }
0x2128   :  { %v2166_v38 = vadd.f32 %v2164_v27, %v194_v46 }
0x212a   :  { %v2436_v39 = vmul.f32 -1.442695, %v2166_v38 }
0x212c   :  { %3090 = vpow2.f32 %v2436_v39 }
0x2136   :  { %v3091_v40 = vpop.eup %3090 }
0x2137   :  { %v2170_v41 = vadd.f32 1.0, %v3091_v40 }
0x2139   :  { %3092 = vrcp.f32 %v2170_v41 }
0x2143   :  { %v3093_v42 = vpop.eup %3092 }
0x2144   :  { %v2176_v43 = vmul.f32 %v3093_v42, %v2174_v10 }
0x2146   :  { %2178 = vrot.lane.b32.xlu1 %v2176_v43, %s3132_s0 }
0x21b8   :  { %v2179_v33 = vpop.permute.xlu1 %2178 }
0x21b9   :  { %2850 = vmatmul.mubr.msk.f32.vlgmr.msra.gmra.mrb[24].mxu1 %vm198_vm3, %v2179_v33 }
0x228c   :  { %v2248_v44 = vpop.f32.mrb[24].mxu1 }
0x228d   :  { %2253 = vrot.lane.b32.xlu0 %v2248_v44, %s3133_s3  ;;  %v2851_v48 = vpop.f32.mrb[25].mxu1 }
0x22ff   :  { %v2254_v36 = vpop.permute.xlu0 %2253 }
0x2300   :  { %v2256_v50 = vadd.f32 %v2254_v36, %v194_v46 }
0x2302   :  { %3094 = vtanh.f32 %v2256_v50 }
0x2303   :  { %3096 = vpow2.f32 %v2434_v54 }
0x230c   :  { %v3095_v45 = vpop.eup %3094 }
0x230d   :  { %v2258_v52 = vsub.f32 %v2009_v30, %v3095_v45  ;;  %v3097_v55 = vpop.eup %3096 }
0x230e   :  { %v2089_v56 = vadd.f32 1.0, %v3097_v55 }
0x230f   :  { %2260 = vrot.lane.b32.xlu1 %v2258_v52, %s3133_s3 }
0x2310   :  { %3098 = vrcp.f32 %v2089_v56 }
0x231a   :  { %v3099_v63 = vpop.eup %3098 }
0x2381   :  { %v2261_v47 = vpop.permute.xlu1 %2260 }
0x2382   :  { %v2263_v0 = vmul.f32 %v3099_v63, %v2261_v47 }
0x2384   :  { %2265 = vrot.lane.b32.xlu0 %v2263_v0, %s3133_s3 }
0x23f6   :  { %v2266_v1 = vpop.permute.xlu0 %2265 }
0x23f7   :  { %v2268_v2 = vadd.f32 %v3095_v45, %v2266_v1 }
0x23f9   :  { %2281 = vrot.lane.b32.xlu1 %v2268_v2, %s3133_s3 }
0x246b   :  { %v2282_v5 = vpop.permute.xlu1 %2281 }
0x246c   :  { %2369 = vst.msk [vmem:[#allocation2] sm:$0xff] %vm198_vm3, %v2282_v5  ;;  %2861 = vmatmul.mubr.msk.f32.vlgmr.msra.gmra.mrb[30].mxu0 %vm198_vm3, %v2282_v5 }
0x253f   :  { %v2351_v3 = vpop.f32.mrb[30].mxu0 }
0x2540   :  { %v2352_v4 = vadd.f32 %v2438_v6, %v2351_v3  ;;  %v2862_v7 = vpop.f32.mrb[31].mxu0 }
0x2542   :  { %v2356_v8 = vsel %vm2355_vm4, %v2352_v4, -inf }
0x2543   :  { %2357 = vmax.xlane.f32.xlu0 %v2356_v8 }
0x25d0   :  { %v2358_v11 = vpop.xlane.xlu0 %2357 }
0x25d1   :  { %v2359_v49 = vsub.f32 %v2352_v4, %v2358_v11 }
0x25d3   :  { %v2360_v12 = vmul.f32 1.442695, %v2359_v49 }
0x25d5   :  { %3100 = vpow2.f32 %v2360_v12 }
0x25df   :  { %v3101_v13 = vpop.eup %3100 }
0x25e0   :  { %v2362_v9 = vsel %vm2355_vm4, %v3101_v13, 0.0 }
0x25e1   :  { %2363 = vadd.xlane.f32.xlu1 %v2362_v9 }
0x25e2   :  { %3115 = shalt.err (!%p3112_p4)
}
0x25e3   :  { %s3116_s24 = scalar_lea.hbm %s3592_s10, 128 }
0x25e4   :  { %p3117_p5 = scmp.ne.s32.totalorder %s3592_s10, %s3116_s24  ;;  %p3120_p6 = scmp.lt.u32.totalorder %s3116_s24, %s3592_s10 }
0x25e6   :  { %p3122_p7 = pnand %p3120_p6, %p3117_p5 }
0x25e8   :  { %3125 = shalt.err (!%p3122_p7)
}
0x25e9   :  { %2381 = dma.vmem_to_hbm [thread:$0]  %s2379_s21, 128, %s3592_s10, [#allocation3]  }
0x266e   :  { %v2364_v15 = vpop.xlane.xlu1 %2363 }
0x266f   :  { %3102 = vrcp.f32 %v2364_v15 }
0x2679   :  { %v3103_v16 = vpop.eup %3102 }
0x267a   :  { %v2366_v51 = vmul.f32 %v3103_v16, %v3101_v13 }
0x267c   :  { %2367 = vst.msk [vmem:[%s3591_s9] sm:$0xff] %vm2355_vm4, %v2366_v51 }
0x267d   :  { %3126 = dma.done.wait [#allocation3], 128  }
0x267e   :  { %3127 = vsyncadd [#allocation3], 4294967168 }
0x267f   :  { %2387 = vsyncpa [#allocation3], 1 }

</bundles_post_ra>
